<compile_context>
chip_gen: v7x
topology: tpu7x:2x2x1
jax: 0.10.0
libtpu: 0.0.40
codegen_flags: <defaults>
</compile_context>

<pallas_src>
import jax
import jax.numpy as jnp
from jax.experimental import pallas as pl
from jax.experimental.pallas import tpu as pltpu

EPS = 1e-5  # nn.LayerNorm default eps


# ----------------------------------------------------------------------------------
# Kernel 1: [gamma | beta] = cond @ [Wg^T | Wb^T] + [bg | bb]   (runs once, tiny)
# ----------------------------------------------------------------------------------
def _gamma_beta_kernel(cond_ref, w_ref, b_ref, g_ref, beta_ref):
    # cond: (B, C), w: (C, 2F) fused pre-transposed weights, b: (1, 2F) fused biases
    F = g_ref.shape[-1]
    cond = cond_ref[...].astype(jnp.float32)
    gb = jnp.dot(cond, w_ref[...].astype(jnp.float32),
                 preferred_element_type=jnp.float32) + b_ref[...].astype(jnp.float32)
    g_ref[...] = gb[:, :F]
    beta_ref[...] = gb[:, F:]


# ----------------------------------------------------------------------------------
# Kernel 2: LayerNorm (no affine) + gamma * xn + beta over (tile_s, B, F) blocks
# ----------------------------------------------------------------------------------
def _adaln_kernel(x_ref, g_ref, b_ref, o_ref):
    x = x_ref[...].astype(jnp.float32)                       # (tile_s, B, F)
    mean = jnp.mean(x, axis=-1, keepdims=True)
    xc = x - mean                                            # bound once (stats + xn)
    var = jnp.mean(xc * xc, axis=-1, keepdims=True)
    xn = xc * jax.lax.rsqrt(var + EPS)
    # gamma/beta are (B, F) resident blocks; leading-dim broadcast is free.
    o_ref[...] = (g_ref[...][None] * xn + b_ref[...][None]).astype(o_ref.dtype)


def _round_up(x, m):
    return ((x + m - 1) // m) * m


def _choose_tile_s(S, B, F, x_itemsize, *, vmem_budget_bytes=36 * 1024 * 1024,
                   max_block_bytes=8 * 1024 * 1024):
    """Pick the sequence-tile length.

    Budgets the real VMEM working set: double-buffered x-in + out blocks (x dtype)
    plus ~4 full-tile f32 temporaries the body materializes, with the last two dims
    padded to the (8, 128) VMEM tile.  Targets blocks of a few MiB (amortizes the
    ~0.35 us per-step overhead) and keeps >= 2 grid steps for v7x megacore sharding.
    """
    Bp = _round_up(B, 8)
    Fp = _round_up(F, 128)
    row_x = Bp * Fp * x_itemsize          # one s-row of an x/out block in VMEM
    row_f32 = Bp * Fp * 4                 # one s-row of an f32 temporary
    ws_per_row = 4 * row_x + 4 * row_f32  # 2x in + 2x out (pipelined) + ~4 f32 temps
    tile_s = min(max(1, vmem_budget_bytes // ws_per_row),
                 max(1, max_block_bytes // row_x))
    if S >= 2:
        tile_s = min(tile_s, -(-S // 2))  # guarantee >= 2 grid steps (v7x: 2 TCs)
    return max(1, min(tile_s, S))


def adaptive_layer_norm(x, cond, wg, bg, wb, bb, *, tile_s=None):
    """x: (S, B, F), cond: (B, C), wg/wb: (F, C) [PyTorch layout], bg/bb: (F,)."""
    S, B, F = x.shape

    # ---- gamma/beta (grid-invariant): one fused matmul, computed once ----
    # In production the fused/transposed weights would be prepared once outside the
    # call path; here we build them from the PyTorch-layout params (tiny arrays).
    w_cat = jnp.concatenate([jnp.transpose(wg), jnp.transpose(wb)], axis=1)  # (C, 2F)
    b_cat = jnp.concatenate([bg, bb]).reshape(1, 2 * F)                      # (1, 2F)
    gamma, beta = pl.pallas_call(
        _gamma_beta_kernel,
        out_shape=(
            jax.ShapeDtypeStruct((B, F), jnp.float32),
            jax.ShapeDtypeStruct((B, F), jnp.float32),
        ),
    )(cond, w_cat, b_cat)

    if tile_s is None:
        tile_s = _choose_tile_s(S, B, F, x.dtype.itemsize)
    tile_s = max(1, min(int(tile_s), S))

    grid = (pl.cdiv(S, tile_s),)
    out = pl.pallas_call(
        _adaln_kernel,
        out_shape=jax.ShapeDtypeStruct((S, B, F), x.dtype),
        grid_spec=pltpu.PrefetchScalarGridSpec(
            num_scalar_prefetch=0,
            grid=grid,
            in_specs=[
                pl.BlockSpec((tile_s, B, F), lambda i: (i, 0, 0)),  # x seq tile
                pl.BlockSpec((B, F), lambda i: (0, 0)),             # gamma (resident)
                pl.BlockSpec((B, F), lambda i: (0, 0)),             # beta  (resident)
            ],
            out_specs=pl.BlockSpec((tile_s, B, F), lambda i: (i, 0, 0)),
        ),
        compiler_params=pltpu.CompilerParams(
            dimension_semantics=("parallel",),        # shard seq tiles across TCs (v7x)
            vmem_limit_bytes=48 * 1024 * 1024,        # fits v7x 64 MiB; < v5e/v6e 128 MiB
        ),
    )(x, gamma, beta)
    return out


def reference(x, cond, wg, bg, wb, bb):
    mean = jnp.mean(x, axis=-1, keepdims=True)
    var = jnp.mean((x - mean) ** 2, axis=-1, keepdims=True)
    xn = (x - mean) / jnp.sqrt(var + EPS)
    gamma = cond @ wg.T + bg     # (B, F)
    beta = cond @ wb.T + bb      # (B, F)
    return gamma[None] * xn + beta[None]


if __name__ == "__main__":
    S, B, F, C = 8, 4, 32, 16  # seq, batch, num_features, cond_dim

    key = jax.random.PRNGKey(0)
    kx, kc, kwg, kbg, kwb, kbb = jax.random.split(key, 6)

    x = jax.random.normal(kx, (S, B, F), dtype=jnp.float32)
    cond = jax.random.normal(kc, (B, C), dtype=jnp.float32)

    # PyTorch Linear weight layout: (out_features, in_features)
    bound = 1.0 / (C ** 0.5)
    wg = jax.random.uniform(kwg, (F, C), minval=-bound, maxval=bound, dtype=jnp.float32)
    bg = jax.random.uniform(kbg, (F,), minval=-bound, maxval=bound, dtype=jnp.float32)
    wb = jax.random.uniform(kwb, (F, C), minval=-bound, maxval=bound, dtype=jnp.float32)
    bb = jax.random.uniform(kbb, (F,), minval=-bound, maxval=bound, dtype=jnp.float32)

    ref = reference(x, cond, wg, bg, wb, bb)

    # default (auto) tiling: >= 2 grid steps
    out = jax.block_until_ready(adaptive_layer_norm(x, cond, wg, bg, wb, bb))
    assert out.shape == (S, B, F)
    assert jnp.allclose(out, ref, atol=1e-5, rtol=1e-5), "mismatch vs reference (auto tile)"

    # multi-step grid with a partial last tile (exercises masking + resident gamma/beta)
    out2 = jax.block_until_ready(adaptive_layer_norm(x, cond, wg, bg, wb, bb, tile_s=3))
    assert jnp.allclose(out2, ref, atol=1e-5, rtol=1e-5), "mismatch vs reference (tile_s=3)"

    # single-step grid path
    out3 = jax.block_until_ready(adaptive_layer_norm(x, cond, wg, bg, wb, bb, tile_s=S))
    assert jnp.allclose(out3, ref, atol=1e-5, rtol=1e-5), "mismatch vs reference (single)"

    print("KERNEL_OK")
</pallas_src>

<mosaic_0001>
module attributes {stable_mosaic.version = 11 : i64} {
  func.func @_gamma_beta_kernel(%arg0: memref<4x16xf32, #tpu.memory_space<vmem>>, %arg1: memref<16x64xf32, #tpu.memory_space<vmem>>, %arg2: memref<1x64xf32, #tpu.memory_space<vmem>>, %arg3: memref<4x32xf32, #tpu.memory_space<vmem>>, %arg4: memref<4x32xf32, #tpu.memory_space<vmem>>) attributes {dimension_semantics = [], scalar_prefetch = 0 : i64, scratch_operands = 0 : i64, tpu.core_type = #tpu.core_type<tc>} {
    %c0 = arith.constant 0 : index
    %c0_0 = arith.constant 0 : index
    %0 = vector.load %arg0[%c0, %c0_0] : memref<4x16xf32, #tpu.memory_space<vmem>>, vector<4x16xf32>
    %c0_1 = arith.constant 0 : index
    %c0_2 = arith.constant 0 : index
    %1 = vector.load %arg1[%c0_1, %c0_2] : memref<16x64xf32, #tpu.memory_space<vmem>>, vector<16x64xf32>
    %cst = arith.constant dense<0.000000e+00> : vector<4x64xf32>
    %2 = tpu.matmul %0, %1, %cst {dimension_numbers = #tpu.dot_dimension_numbers<[1], [0], [0], [1], [0, 0, 1, 1], [], []>} : vector<4x16xf32>, vector<16x64xf32>, vector<4x64xf32> -> vector<4x64xf32>
    %c0_3 = arith.constant 0 : index
    %c0_4 = arith.constant 0 : index
    %3 = vector.load %arg2[%c0_3, %c0_4] : memref<1x64xf32, #tpu.memory_space<vmem>>, vector<1x64xf32>
    %4 = vector.broadcast %3 : vector<1x64xf32> to vector<4x64xf32>
    %5 = arith.addf %2, %4 : vector<4x64xf32>
    %6 = vector.extract_strided_slice %5 {offsets = [0, 0], sizes = [4, 32], strides = [1, 1]} : vector<4x64xf32> to vector<4x32xf32>
    %c0_5 = arith.constant 0 : index
    %c0_6 = arith.constant 0 : index
    %7 = vector.load %arg3[%c0_5, %c0_6] : memref<4x32xf32, #tpu.memory_space<vmem>>, vector<4x32xf32>
    tpu.vector_store %arg3[%c0_5, %c0_6], %6 {strides = array<i32>} : memref<4x32xf32, #tpu.memory_space<vmem>>, vector<4x32xf32>,
    %8 = vector.extract_strided_slice %5 {offsets = [0, 32], sizes = [4, 32], strides = [1, 1]} : vector<4x64xf32> to vector<4x32xf32>
    %c0_7 = arith.constant 0 : index
    %c0_8 = arith.constant 0 : index
    %9 = vector.load %arg4[%c0_7, %c0_8] : memref<4x32xf32, #tpu.memory_space<vmem>>, vector<4x32xf32>
    tpu.vector_store %arg4[%c0_7, %c0_8], %8 {strides = array<i32>} : memref<4x32xf32, #tpu.memory_space<vmem>>, vector<4x32xf32>,
    return
  }
}

</mosaic_0001>

<bundles_post_ra>
// kernel: tpu_custom_call.1
= control target key start
LH: loop header
LB: loop body
LE: loop exit
PB: predicated region body
PF: predicated region fallthrough
CT: control target
= control target key end

     0   :  { %10 = vsyncpa [#allocation3], 0  ;;  %s381_s0 = inlined_call_operand.hbm [shape: f32[4,16], index: 0, kind: input, shape index: {}]   ;;  %s382_s1 = inlined_call_operand.hbm [shape: f32[16,64], index: 1, kind: input, shape index: {}]   ;;  %s383_s2 = inlined_call_operand.vmem [shape: f32[1,64], index: 2, kind: input, shape index: {}]   ;;  %s384_s3 = inlined_call_operand.hbm [shape: f32[4,32], index: 3, kind: output, shape index: {0}]   ;;  %s385_s4 = inlined_call_operand.hbm [shape: f32[4,32], index: 4, kind: output, shape index: {1}]  }
   0x1   :  { %11 = vsyncpa [#allocation6], 0 }
   0x2   :  { %12 = vsyncpa [#allocation4], 0 }
   0x3   :  { %13 = vsyncpa [#allocation9], 0  ;;  %s286_s15 = smov [#allocation2]   ;;  %s287_s17 = smov [#allocation5]  }
   0x4   :  { %s20_s16 = sshll.u32 %s286_s15, 4  ;;  %s29_s18 = sshll.u32 %s287_s17, 4  ;;  %s21_s16 = int_to_ptr.vmem [resolvable:$true] %s20_s16  ;;  %s321_s18 = int_to_ptr.vmem [resolvable:$true] %s29_s18 }
   0x5   :  { %s190_s21 = scalar_lea.hbm %s381_s0, 64 }
   0x6   :  { %p191_p0 = scmp.ne.s32.totalorder %s381_s0, %s190_s21  ;;  %p194_p1 = scmp.lt.u32.totalorder %s190_s21, %s381_s0 }
   0x8   :  { %p196_p2 = pnand %p194_p1, %p191_p0 }
   0xa   :  { %199 = shalt.err (!%p196_p2)
}
   0xb   :  { %s200_s26 = scalar_lea.vmem %s21_s16, 64  ;;  %p205_p4 = scmp.lt.s32.totalorder %s21_s16, %s21_s16 }
   0xc   :  { %p201_p3 = scmp.ne.s32.totalorder %s21_s16, %s200_s26  ;;  %p206_p5 = scmp.lt.s32.totalorder %s200_s26, %s200_s26 }
   0xe   :  { %p207_p6 = por %p206_p5, %p205_p4 }
  0x10   :  { %p208_p7 = pnand %p207_p6, %p201_p3 }
  0x12   :  { %211 = shalt.err (!%p208_p7)
}
  0x13   :  { %23 = dma.hbm_to_vmem [thread:$0]  %s381_s0, 64, %s21_s16, [#allocation3]  }
  0x14   :  { %s212_s5 = scalar_lea.hbm %s382_s1, 256 }
  0x15   :  { %p213_p8 = scmp.ne.s32.totalorder %s382_s1, %s212_s5  ;;  %p216_p9 = scmp.lt.u32.totalorder %s212_s5, %s382_s1 }
  0x17   :  { %p218_p10 = pnand %p216_p9, %p213_p8 }
  0x19   :  { %221 = shalt.err (!%p218_p10)
}
  0x1a   :  { %s222_s10 = scalar_lea.vmem %s321_s18, 256  ;;  %p227_p12 = scmp.lt.s32.totalorder %s321_s18, %s321_s18 }
  0x1b   :  { %p223_p11 = scmp.ne.s32.totalorder %s321_s18, %s222_s10  ;;  %p228_p13 = scmp.lt.s32.totalorder %s222_s10, %s222_s10 }
  0x1d   :  { %p229_p0 = por %p228_p13, %p227_p12 }
  0x1f   :  { %p230_p1 = pnand %p229_p0, %p223_p11 }
  0x21   :  { %233 = shalt.err (!%p230_p1)
}
  0x22   :  { %s288_s0 = smov 128   ;;  %s289_s11 = smov 8  }
  0x23   :  { %35 = dma.hbm_to_vmem [thread:$0]  %s382_s1, 256, %s321_s18, [#allocation6], %s288_s0, %s288_s0, %s289_s11  }
  0x24   :  { %278 = dma.done.wait [#allocation3], 64  }
  0x25   :  { %279 = vsyncadd [#allocation3], 4294967232 }
  0x26   :  { %280 = dma.done.wait [#allocation6], 256  }
  0x27   :  { %281 = vsyncadd [#allocation6], 4294967040  ;;  %v290_v0 = vmov 0.0|0.0   ;;  %vm291_vm0 = vmmov 0   ;;  %v292_v1 = vmov 0.0   ;;  %v45_v2 = vld [vmem:[#allocation5] sm:$0xff] }
  0x28   :  { %177 = vmatprep.subr.bf16.mxu0 %v290_v0  ;;  %174 = vmatprep.mubr.msk.f32.mxu0 %vm291_vm0, %v292_v1  ;;  %v46_v3 = vld [vmem:[#allocation5 + $0x8] sm:$0xff]  ;;  %v44_v5 = vld [vmem:[#allocation2] sm:$0xf]  ;;  %vm54_vm1 = vcmask 130048   ;;  %s293_s1 = smov [#allocation7]   ;;  %vm128_vm2 = vcmask 257024  }
  0x29   :  { %v178_v4 = vpack.c.bf16 %v46_v3, %v45_v2  ;;  %v165_v6 = vld [vmem:[%s383_s2] ss:$0 sm:$0xff]  ;;  %s141_s16 = sshll.u32 %s293_s1, 4  ;;  %s294_s17 = smov 96   ;;  %s142_s16 = int_to_ptr.vmem [resolvable:$true] %s141_s16 }
  0x2a   :  { %s234_s18 = scalar_lea.vmem %s142_s16, 64  ;;  %p239_p3 = scmp.lt.s32.totalorder %s142_s16, %s142_s16 }
  0x2b   :  { %179 = vmatpush3.bf16.msra.mxu0 %v178_v4  ;;  %p235_p2 = scmp.ne.s32.totalorder %s142_s16, %s234_s18  ;;  %p240_p4 = scmp.lt.s32.totalorder %s234_s18, %s234_s18 }
  0x2d   :  { %p241_p5 = por %p240_p4, %p239_p3 }
  0x2e   :  { %175 = vmatmul.mubr.msk.f32.vlgmr.msra.gmra.mrb[0].mxu0 %vm54_vm1, %v44_v5 }
  0x2f   :  { %p242_p6 = pnand %p241_p5, %p235_p2 }
 0x101   :  { %v124_v7 = vpop.f32.mrb[0].mxu0 }
 0x102   :  { %v125_v8 = vadd.f32 %v165_v6, %v124_v7  ;;  %v176_v9 = vpop.f32.mrb[1].mxu0 }
 0x104   :  { %131 = vrot.lane.b32.xlu0 %v125_v8, %s294_s17  ;;  %129 = vst.msk [vmem:[#allocation7] sm:$0xf] %vm128_vm2, %v125_v8 }
 0x105   :  { %245 = shalt.err (!%p242_p6)
}
 0x106   :  { %s246_s20 = scalar_lea.hbm %s384_s3, 64 }
 0x107   :  { %p247_p7 = scmp.ne.s32.totalorder %s384_s3, %s246_s20  ;;  %p250_p8 = scmp.lt.u32.totalorder %s246_s20, %s384_s3 }
 0x109   :  { %p252_p9 = pnand %p250_p8, %p247_p7 }
 0x10b   :  { %255 = shalt.err (!%p252_p9)
}
 0x10c   :  { %144 = dma.vmem_to_hbm [thread:$0]  %s142_s16, 64, %s384_s3, [#allocation4]  }
 0x10d   :  { %s295_s27 = smov [#allocation8]  }
 0x10e   :  { %s151_s28 = sshll.u32 %s295_s27, 4  ;;  %s152_s28 = int_to_ptr.vmem [resolvable:$true] %s151_s28 }
 0x10f   :  { %s256_s29 = scalar_lea.vmem %s152_s28, 64  ;;  %p261_p11 = scmp.lt.s32.totalorder %s152_s28, %s152_s28 }
 0x110   :  { %p257_p10 = scmp.ne.s32.totalorder %s152_s28, %s256_s29  ;;  %p262_p12 = scmp.lt.s32.totalorder %s256_s29, %s256_s29 }
 0x112   :  { %p263_p13 = por %p262_p12, %p261_p11 }
 0x114   :  { %p264_p0 = pnand %p263_p13, %p257_p10 }
 0x176   :  { %v132_v10 = vpop.permute.xlu0 %131 }
 0x177   :  { %134 = vst.msk [vmem:[#allocation8] sm:$0xf] %vm128_vm2, %v132_v10 }
 0x178   :  { %267 = shalt.err (!%p264_p0)
}
 0x179   :  { %s268_s6 = scalar_lea.hbm %s385_s4, 64 }
 0x17a   :  { %p269_p1 = scmp.ne.s32.totalorder %s385_s4, %s268_s6  ;;  %p272_p2 = scmp.lt.u32.totalorder %s268_s6, %s385_s4 }
 0x17c   :  { %p274_p3 = pnand %p272_p2, %p269_p1 }
 0x17e   :  { %277 = shalt.err (!%p274_p3)
}
 0x17f   :  { %154 = dma.vmem_to_hbm [thread:$0]  %s152_s28, 64, %s385_s4, [#allocation9]  }
 0x180   :  { %282 = dma.done.wait [#allocation4], 64  }
 0x181   :  { %283 = vsyncadd [#allocation4], 4294967232 }
 0x182   :  { %284 = dma.done.wait [#allocation9], 64  }
 0x183   :  { %285 = vsyncadd [#allocation9], 4294967232 }
 0x184   :  { %161 = vsyncpa [#allocation3], 1 }
 0x185   :  { %162 = vsyncpa [#allocation6], 1 }
 0x186   :  { %163 = vsyncpa [#allocation4], 1 }
 0x187   :  { %164 = vsyncpa [#allocation9], 1 }

</bundles_post_ra>
